<compile_context>
chip_gen: v7x
topology: tpu7x:2x2x1
jax: 0.10.0
libtpu: 0.0.40
codegen_flags: <defaults>
</compile_context>

<pallas_src>
import functools

import jax
import jax.numpy as jnp
from jax.experimental import pallas as pl
from jax.experimental.pallas import tpu as pltpu


def _sc_loss_kernel(e1_ref, e2_ref, lab_col_ref, lab_row_ref, out_ref, keys_ref,
                    *, inv_temp, n_total, tq, batch, inner_steps):
    # ---- Fill the normalized-key scratch once per core (not per query tile).
    @pl.when(pl.program_id(1) == 0)
    def _init_keys():
        eps2 = jnp.float32(1e-24)  # (1e-12)^2: F.normalize clamps the norm at 1e-12
        e1 = e1_ref[...].astype(jnp.float32)
        e2 = e2_ref[...].astype(jnp.float32)
        inv1 = jax.lax.rsqrt(jnp.maximum(jnp.sum(e1 * e1, axis=-1, keepdims=True), eps2))
        inv2 = jax.lax.rsqrt(jnp.maximum(jnp.sum(e2 * e2, axis=-1, keepdims=True), eps2))
        keys_ref[pl.ds(0, batch), :] = e1 * inv1
        keys_ref[pl.ds(batch, batch), :] = e2 * inv2

    # ---- query tile = slice of the normalized keys; fold 1/T into the small tile
    tile_idx = pl.program_id(0) * inner_steps + pl.program_id(1)
    qstart = pl.multiple_of(tile_idx * tq, tq)
    q = keys_ref[pl.ds(qstart, tq), :] * jnp.float32(inv_temp)      # (TQ, D)
    keys = keys_ref[...]                                            # (N,  D)

    # (TQ, N) similarity block on the MXU (contract the embedding dim, no
    # explicit transpose of keys).
    dots = jax.lax.dot_general(
        q, keys, (((1,), (1,)), ((), ())),
        preferred_element_type=jnp.float32)

    # ---- masking + per-row reductions only (no (TQ,N) loss/logits temporaries)
    same = lab_col_ref[...] == lab_row_ref[...]                     # (TQ, N) bool
    pos = jnp.where(same, dots, 0.0)                                # dots * mask
    neg = jnp.where(same, 0.0, dots)                                # dots * (1-mask)

    sum_pos = jnp.sum(pos, axis=1, keepdims=True)                   # (TQ, 1)
    max_pos = jnp.max(pos, axis=1, keepdims=True)
    max_neg = jnp.max(neg, axis=1, keepdims=True)
    lse = jnp.log(jnp.sum(jnp.exp(neg - max_neg), axis=1, keepdims=True))

    # sum_j loss[i, j] for the rows of this tile
    out_ref[...] = -sum_pos + jnp.float32(n_total) * (max_pos + max_neg + lse)


def _pick_tq(n):
    for t in (256, 128, 64, 32, 16, 8):
        if n % t == 0 and n // t >= 2:
            return t
    return n


def supervised_contrastive_loss(emb_1, emb_2, labels1, labels2, temperature=0.1):
    """Pallas TPU implementation of SupervisedContrastiveLoss.forward."""
    b, d = emb_1.shape
    n = 2 * b

    # Labels are tiny (O(N) int32): prepare row/col layouts in the wrapper so
    # the kernel builds the equality mask with a plain broadcasted compare.
    labels = jnp.concatenate([labels1, labels2], axis=0).astype(jnp.int32)
    lab_col = labels.reshape(n, 1)
    lab_row = labels.reshape(1, n)

    tq = _pick_tq(n)
    num_tiles = n // tq
    ncores = 2 if num_tiles % 2 == 0 else 1   # megacore split on v7x
    inner = num_tiles // ncores
    grid = (ncores, inner)

    kernel = functools.partial(
        _sc_loss_kernel,
        inv_temp=1.0 / float(temperature),
        n_total=n, tq=tq, batch=b, inner_steps=inner)

    tile_map = lambda i, j: (i * inner + j, 0)

    row_loss = pl.pallas_call(
        kernel,
        out_shape=jax.ShapeDtypeStruct((n, 1), jnp.float32),
        grid_spec=pltpu.PrefetchScalarGridSpec(
            num_scalar_prefetch=0,
            grid=grid,
            in_specs=[
                pl.BlockSpec((b, d), lambda i, j: (0, 0)),   # emb_1 (native dtype)
                pl.BlockSpec((b, d), lambda i, j: (0, 0)),   # emb_2 (native dtype)
                pl.BlockSpec((tq, 1), tile_map),              # label column tile
                pl.BlockSpec((1, n), lambda i, j: (0, 0)),    # label row (full)
            ],
            out_specs=pl.BlockSpec((tq, 1), tile_map),
            scratch_shapes=[pltpu.VMEM((n, d), jnp.float32)],  # normalized keys
        ),
        compiler_params=pltpu.CompilerParams(
            dimension_semantics=("parallel", "arbitrary")),
    )(emb_1, emb_2, lab_col, lab_row)

    # Tiny final combine: mean over the full (N, N) loss matrix.
    return jnp.sum(row_loss) / (n * n)


def _reference_loss(emb_1, emb_2, labels1, labels2, temperature=0.1):
    """Pure-JAX reference mirroring the PyTorch forward exactly (full NxN)."""
    def normalize(x):
        nrm = jnp.sqrt(jnp.sum(x * x, axis=-1, keepdims=True))
        return x / jnp.maximum(nrm, 1e-12)

    e1 = normalize(emb_1.astype(jnp.float32))
    e2 = normalize(emb_2.astype(jnp.float32))
    embs = jnp.concatenate([e1, e2], axis=0)
    labels = jnp.concatenate([labels1, labels2], axis=0)
    dots = (embs @ embs.T) / temperature
    lm = (labels[:, None] == labels[None, :]).astype(jnp.float32)
    pos = dots * lm
    neg = dots * (1.0 - lm)
    max_pos = jnp.max(pos, axis=1, keepdims=True)
    max_neg = jnp.max(neg, axis=1, keepdims=True)
    logits = pos - max_pos - max_neg
    lse = jnp.log(jnp.sum(jnp.exp(neg - max_neg), axis=1, keepdims=True))
    loss = -logits + lse
    return jnp.mean(loss)


if __name__ == "__main__":
    batch = 8
    dim = 32
    num_classes = 4

    key = jax.random.PRNGKey(0)
    k1, k2, k3, k4 = jax.random.split(key, 4)
    emb_1 = jax.random.normal(k1, (batch, dim), dtype=jnp.float32)
    emb_2 = jax.random.normal(k2, (batch, dim), dtype=jnp.float32)
    labels1 = jax.random.randint(k3, (batch,), 0, num_classes, dtype=jnp.int32)
    labels2 = jax.random.randint(k4, (batch,), 0, num_classes, dtype=jnp.int32)

    out = supervised_contrastive_loss(emb_1, emb_2, labels1, labels2, temperature=0.1)
    out = jax.block_until_ready(out)

    ref = _reference_loss(emb_1, emb_2, labels1, labels2, temperature=0.1)
    ref = jax.block_until_ready(ref)

    assert jnp.allclose(out, ref, rtol=1e-5, atol=1e-4), (out, ref)
    print("KERNEL_OK")
</pallas_src>

<mosaic_0001>
module attributes {stable_mosaic.version = 11 : i64} {
  func.func @_sc_loss_kernel(%arg0: i32, %arg1: i32, %arg2: memref<8x32xf32, #tpu.memory_space<vmem>>, %arg3: memref<8x32xf32, #tpu.memory_space<vmem>>, %arg4: memref<8x1xi32, #tpu.memory_space<vmem>>, %arg5: memref<1x16xi32, #tpu.memory_space<vmem>>, %arg6: memref<8x1xf32, #tpu.memory_space<vmem>>, %arg7: memref<16x32xf32, #tpu.memory_space<vmem>>) attributes {dimension_semantics = [#tpu.dimension_semantics<parallel>, #tpu.dimension_semantics<arbitrary>], iteration_bounds = array<i64: 2, 1>, scalar_prefetch = 0 : i64, scratch_operands = 1 : i64, tpu.core_type = #tpu.core_type<tc>, window_params = [{pipeline_mode = #tpu.pipeline_mode<synchronous>, transform_indices = @transform_0, window_bounds = array<i64: 8, 32>}, {pipeline_mode = #tpu.pipeline_mode<synchronous>, transform_indices = @transform_1, window_bounds = array<i64: 8, 32>}, {transform_indices = @transform_2, window_bounds = array<i64: 8, 1>}, {pipeline_mode = #tpu.pipeline_mode<synchronous>, transform_indices = @transform_3, window_bounds = array<i64: 1, 16>}, {transform_indices = @transform_4, window_bounds = array<i64: 8, 1>}]} {
    %c0_i32 = arith.constant 0 : i32
    %0 = arith.cmpi eq, %arg1, %c0_i32 : i32
    %1 = arith.extui %0 : i1 to i32
    %c0_i32_0 = arith.constant 0 : i32
    %2 = arith.cmpi ne, %1, %c0_i32_0 : i32
    scf.if %2 {
      %c0_18 = arith.constant 0 : index
      %c0_19 = arith.constant 0 : index
      %42 = vector.load %arg2[%c0_18, %c0_19] : memref<8x32xf32, #tpu.memory_space<vmem>>, vector<8x32xf32>
      %c0_20 = arith.constant 0 : index
      %c0_21 = arith.constant 0 : index
      %43 = vector.load %arg3[%c0_20, %c0_21] : memref<8x32xf32, #tpu.memory_space<vmem>>, vector<8x32xf32>
      %44 = arith.mulf %42, %42 : vector<8x32xf32>
      %cst_22 = arith.constant dense<0.000000e+00> : vector<8xf32>
      %45 = vector.multi_reduction <add>, %44, %cst_22 [1] : vector<8x32xf32> to vector<8xf32>
      %46 = vector.shape_cast %45 : vector<8xf32> to vector<8x1xf32>
      %cst_23 = arith.constant 1.000000e-24 : f32
      %47 = vector.broadcast %cst_23 : f32 to vector<8x1xf32>
      %48 = arith.maximumf %46, %47 : vector<8x1xf32>
      %49 = math.rsqrt %48 : vector<8x1xf32>
      %50 = arith.mulf %43, %43 : vector<8x32xf32>
      %cst_24 = arith.constant dense<0.000000e+00> : vector<8xf32>
      %51 = vector.multi_reduction <add>, %50, %cst_24 [1] : vector<8x32xf32> to vector<8xf32>
      %52 = vector.shape_cast %51 : vector<8xf32> to vector<8x1xf32>
      %cst_25 = arith.constant 1.000000e-24 : f32
      %53 = vector.broadcast %cst_25 : f32 to vector<8x1xf32>
      %54 = arith.maximumf %52, %53 : vector<8x1xf32>
      %55 = math.rsqrt %54 : vector<8x1xf32>
      %56 = vector.broadcast %49 : vector<8x1xf32> to vector<8x32xf32>
      %57 = arith.mulf %42, %56 : vector<8x32xf32>
      %c0_26 = arith.constant 0 : index
      %c0_27 = arith.constant 0 : index
      %58 = vector.load %arg7[%c0_26, %c0_27] : memref<16x32xf32, #tpu.memory_space<vmem>>, vector<8x32xf32>
      tpu.vector_store %arg7[%c0_26, %c0_27], %57 {strides = array<i32>} : memref<16x32xf32, #tpu.memory_space<vmem>>, vector<8x32xf32>,
      %59 = vector.broadcast %55 : vector<8x1xf32> to vector<8x32xf32>
      %60 = arith.mulf %43, %59 : vector<8x32xf32>
      %c8 = arith.constant 8 : index
      %c0_28 = arith.constant 0 : index
      %61 = vector.load %arg7[%c8, %c0_28] : memref<16x32xf32, #tpu.memory_space<vmem>>, vector<8x32xf32>
      tpu.vector_store %arg7[%c8, %c0_28], %60 {strides = array<i32>} : memref<16x32xf32, #tpu.memory_space<vmem>>, vector<8x32xf32>,
    } else {
    }
    %c1_i32 = arith.constant 1 : i32
    %3 = arith.muli %arg0, %c1_i32 : i32
    %4 = arith.addi %3, %arg1 : i32
    %c8_i32 = arith.constant 8 : i32
    %5 = arith.muli %4, %c8_i32 : i32
    %6 = tpu.assume_multiple %5, 8 : i32
    %7 = arith.index_cast %6 : i32 to index
    %c0 = arith.constant 0 : index
    %8 = vector.load %arg7[%7, %c0] : memref<16x32xf32, #tpu.memory_space<vmem>>, vector<8x32xf32>
    %cst = arith.constant 1.000000e+01 : f32
    %9 = vector.broadcast %cst : f32 to vector<8x32xf32>
    %10 = arith.mulf %8, %9 : vector<8x32xf32>
    %c0_1 = arith.constant 0 : index
    %c0_2 = arith.constant 0 : index
    %11 = vector.load %arg7[%c0_1, %c0_2] : memref<16x32xf32, #tpu.memory_space<vmem>>, vector<16x32xf32>
    %cst_3 = arith.constant dense<0.000000e+00> : vector<8x16xf32>
    %12 = tpu.matmul %10, %11, %cst_3 {dimension_numbers = #tpu.dot_dimension_numbers<[1], [1], [0], [0], [0, 0, 1, 0], [], []>} : vector<8x32xf32>, vector<16x32xf32>, vector<8x16xf32> -> vector<8x16xf32>
    %c0_4 = arith.constant 0 : index
    %c0_5 = arith.constant 0 : index
    %13 = vector.load %arg4[%c0_4, %c0_5] : memref<8x1xi32, #tpu.memory_space<vmem>>, vector<8x1xi32>
    %c0_6 = arith.constant 0 : index
    %c0_7 = arith.constant 0 : index
    %14 = vector.load %arg5[%c0_6, %c0_7] : memref<1x16xi32, #tpu.memory_space<vmem>>, vector<1x16xi32>
    %15 = vector.broadcast %13 : vector<8x1xi32> to vector<8x16xi32>
    %16 = vector.broadcast %14 : vector<1x16xi32> to vector<8x16xi32>
    %17 = arith.cmpi eq, %15, %16 : vector<8x16xi32>
    %cst_8 = arith.constant 0.000000e+00 : f32
    %18 = vector.broadcast %cst_8 : f32 to vector<8x16xf32>
    %19 = arith.select %17, %12, %18 : vector<8x16xi1>, vector<8x16xf32>
    %cst_9 = arith.constant 0.000000e+00 : f32
    %20 = vector.broadcast %cst_9 : f32 to vector<8x16xf32>
    %21 = arith.select %17, %20, %12 : vector<8x16xi1>, vector<8x16xf32>
    %cst_10 = arith.constant dense<0.000000e+00> : vector<8xf32>
    %22 = vector.multi_reduction <add>, %19, %cst_10 [1] : vector<8x16xf32> to vector<8xf32>
    %23 = vector.shape_cast %22 : vector<8xf32> to vector<8x1xf32>
    %cst_11 = arith.constant dense<0xFF800000> : vector<8xf32>
    %24 = vector.multi_reduction <maximumf>, %19, %cst_11 [1] : vector<8x16xf32> to vector<8xf32>
    %25 = vector.shape_cast %24 : vector<8xf32> to vector<8x1xf32>
    %cst_12 = arith.constant dense<0xFF800000> : vector<8xf32>
    %26 = vector.multi_reduction <maximumf>, %21, %cst_12 [1] : vector<8x16xf32> to vector<8xf32>
    %27 = vector.shape_cast %26 : vector<8xf32> to vector<8x1xf32>
    %28 = vector.broadcast %27 : vector<8x1xf32> to vector<8x16xf32>
    %29 = arith.subf %21, %28 : vector<8x16xf32>
    %30 = math.exp %29 : vector<8x16xf32>
    %cst_13 = arith.constant dense<0.000000e+00> : vector<8xf32>
    %31 = vector.multi_reduction <add>, %30, %cst_13 [1] : vector<8x16xf32> to vector<8xf32>
    %32 = vector.shape_cast %31 : vector<8xf32> to vector<8x1xf32>
    %33 = math.log %32 : vector<8x1xf32>
    %cst_14 = arith.constant 0.000000e+00 : f32
    %34 = vector.broadcast %cst_14 : f32 to vector<8x1xf32>
    %35 = arith.subf %34, %23 : vector<8x1xf32>
    %36 = arith.addf %25, %27 : vector<8x1xf32>
    %37 = arith.addf %36, %33 : vector<8x1xf32>
    %cst_15 = arith.constant 1.600000e+01 : f32
    %38 = vector.broadcast %cst_15 : f32 to vector<8x1xf32>
    %39 = arith.mulf %38, %37 : vector<8x1xf32>
    %40 = arith.addf %35, %39 : vector<8x1xf32>
    %c0_16 = arith.constant 0 : index
    %c0_17 = arith.constant 0 : index
    %41 = vector.load %arg6[%c0_16, %c0_17] : memref<8x1xf32, #tpu.memory_space<vmem>>, vector<8x1xf32>
    tpu.vector_store %arg6[%c0_16, %c0_17], %40 {strides = array<i32>} : memref<8x1xf32, #tpu.memory_space<vmem>>, vector<8x1xf32>,
    return
  }
  func.func @transform_0(%arg0: i32, %arg1: i32) -> (i32, i32) {
    %c0_i32 = arith.constant 0 : i32
    %c0_i32_0 = arith.constant 0 : i32
    %c0_i32_1 = arith.constant 0 : i32
    return %c0_i32, %c0_i32_0 : i32, i32
  }
  func.func @transform_1(%arg0: i32, %arg1: i32) -> (i32, i32) {
    %c0_i32 = arith.constant 0 : i32
    %c0_i32_0 = arith.constant 0 : i32
    %c0_i32_1 = arith.constant 0 : i32
    return %c0_i32, %c0_i32_0 : i32, i32
  }
  func.func @transform_2(%arg0: i32, %arg1: i32) -> (i32, i32) {
    %c1_i32 = arith.constant 1 : i32
    %0 = arith.muli %arg0, %c1_i32 : i32
    %1 = arith.addi %0, %arg1 : i32
    %c0_i32 = arith.constant 0 : i32
    %c0_i32_0 = arith.constant 0 : i32
    return %1, %c0_i32 : i32, i32
  }
  func.func @transform_3(%arg0: i32, %arg1: i32) -> (i32, i32) {
    %c0_i32 = arith.constant 0 : i32
    %c0_i32_0 = arith.constant 0 : i32
    %c0_i32_1 = arith.constant 0 : i32
    return %c0_i32, %c0_i32_0 : i32, i32
  }
  func.func @transform_4(%arg0: i32, %arg1: i32) -> (i32, i32) {
    %c1_i32 = arith.constant 1 : i32
    %0 = arith.muli %arg0, %c1_i32 : i32
    %1 = arith.addi %0, %arg1 : i32
    %c0_i32 = arith.constant 0 : i32
    %c0_i32_0 = arith.constant 0 : i32
    return %1, %c0_i32 : i32, i32
  }
}

</mosaic_0001>

<bundles_post_ra>
// kernel: tpu_custom_call.1
= control target key start
LH: loop header
LB: loop body
LE: loop exit
PB: predicated region body
PF: predicated region fallthrough
CT: control target
= control target key end

     0   :  { %s551_s15 = smov 0   ;;  %s553_s16 = smov 0   ;;  %s616_s0 = inlined_call_operand.vmem [shape: f32[8,32], index: 0, kind: input, shape index: {}]   ;;  %s617_s1 = inlined_call_operand.vmem [shape: f32[8,32], index: 1, kind: input, shape index: {}]   ;;  %s618_s2 = inlined_call_operand.vmem [shape: s32[16,1], index: 2, kind: input, shape index: {}]   ;;  %s619_s3 = inlined_call_operand.vmem [shape: s32[1,16], index: 3, kind: input, shape index: {}]   ;;  %s620_s4 = inlined_call_operand.vmem [shape: f32[16,1], index: 4, kind: output, shape index: {}]  }
   0x1   :  { %s555_s17 = smov 0  }
   0x2 LB: > { %s26_s18 = sadd.s32 1, %s516_s16  ;;  %p436_p0 = scmp.ge.s32.totalorder %s520_s17, 1  ;;  %s520_s17 = sphi %s555_s17, %s14_s17   ;;  %s516_s16 = sphi %s553_s16, %s622_s16   ;;  %s512_s15 = sphi %s551_s15, %s621_s15  }
   0x3   : > { %p28_p1 = scmp.ge.s32.totalorder %s26_s18, 2  ;;  %p179_p2 = scmp.lt.s32.totalorder %s520_s17, 3 }
   0x5   : > { %s624_s18 = smov (%p28_p1, %s26_s18), 0  ;;  %p180_p3 = pnand %p436_p0, %p179_p2 }
   0x6   : > { %v221_v0 = vld [vmem:[%s616_s0] sm:$0xff] (!%p180_p3)  ;;  %vm224_vm0 = vcmask (!%p180_p3), 261120   ;;  %v522_v6 = vmov (!%p180_p3), 0.0|0.0   ;;  %vm523_vm1 = vmmov (!%p180_p3), 0   ;;  %v524_v7 = vmov (!%p180_p3), 0.0   ;;  %p206_p4 = scmp.lt.s32.totalorder (!%p180_p3), %s512_s15, 1 }
   0x7   : > { %183 = sbr.rel (%p180_p3) target bundleno = 722 (0x2d2), region = 36  ;;  %v222_v1 = vld [vmem:[%s617_s1] sm:$0xff] (!%p180_p3)  ;;  %v223_v2 = vmul.f32 (!%p180_p3), %v221_v0, %v221_v0  ;;  %456 = vmatprep.subr.bf16.mxu0 (!%p180_p3), %v522_v6  ;;  %453 = vmatprep.mubr.msk.f32.mxu0 (!%p180_p3), %vm523_vm1, %v524_v7  ;;  %v525_v8 = vmov (!%p180_p3), 0   ;;  %s439_s28 = sshll.u32 (!%p180_p3), %s512_s15, 3  ;;  %vm458_vm2 = vmpackc.low (!%p180_p3), %vm224_vm0, %vm224_vm0  ;;  %vm339_vm4 = vcmask (!%p180_p3), 130048   ;;  %vm362_vm5 = vcmask (!%p180_p3), 7168  }
   0x8   : > { %v230_v3 = vmul.f32 (!%p180_p3), %v222_v1, %v222_v1  ;;  %488 = vset.pattern.permute.xlu1 (!%p180_p3), %v525_v8  ;;  %489 = vset.pattern.permute.xlu0 (!%p180_p3), %v525_v8  ;;  %s242_s29 = scalar_lea.vmem (!%p180_p3), [#allocation2], %s439_s28  ;;  %v443_v23 = vld [vmem:[%s619_s3] ss:$0 sm:$0xff] (!%p180_p3) }
   0x9   : > { %v225_v4 = vsel (!%p180_p3), %vm224_vm0, %v223_v2, 0.0 }
   0xa   : > { %226 = vadd.xlane.f32.xlu0 (!%p180_p3), %v225_v4  ;;  %v231_v5 = vsel (!%p180_p3), %vm224_vm0, %v230_v3, 0.0 }
   0xe   : > { %232 = vadd.xlane.f32.xlu0 %v231_v5  ;;  %s581_s23 = scalar_select %p206_p4, %s512_s15, 1 }
  0x10   : > { %s437_s24 = sshll.u32 %s581_s23, 3 }
  0x11   : > { %s209_s27 = scalar_lea.vmem %s618_s2, %s437_s24  ;;  %s215_s8 = scalar_lea.vmem %s620_s4, %s437_s24 }
  0x12   : > { %v327_v9 = vld [vmem:[%s209_s27] sm:$0xff] }
  0x13   : > { %330 = vperm.xlu1 %488, %v327_v9  }
  0x92   : > { %v331_v24 = vpop.permute.xlu1 %330 }
  0x93   : > { %vm336_vm3 = vcmp.eq.s32.totalorder %v331_v24, %v443_v23 }
  0x97   : > { %v227_v10 = vpop.xlane.xlu0 %226 }
  0x98   : > { %v228_v11 = vmax.f32 %v227_v10, 1e-24 }
  0x9a   : > { %490 = vrsqrt.f32 %v228_v11 }
  0x9b   : > { %v233_v12 = vpop.xlane.xlu0 %232 }
  0x9c   : > { %v234_v13 = vmax.f32 %v233_v12, 1e-24 }
  0x9e   : > { %492 = vrsqrt.f32 %v234_v13 }
  0xa4   : > { %v491_v14 = vpop.eup %490 }
  0xa5   : > { %v236_v15 = vmul.f32 %v491_v14, %v221_v0 }
  0xa7   : > { %237 = vst.msk [vmem:[#allocation2] sm:$0xff] %vm224_vm0, %v236_v15 }
  0xa8   : > { %v493_v16 = vpop.eup %492 }
  0xa9   : > { %v238_v17 = vmul.f32 %v493_v16, %v222_v1 }
  0xab   : > { %239 = vst.msk [vmem:[#allocation2 + $0x8] sm:$0xff] %vm224_vm0, %v238_v17 }
  0xae   : > { %v245_v18 = vld [vmem:[#allocation2] sm:$0xff] }
  0xb2   : > { %v246_v19 = vld [vmem:[#allocation2 + $0x8] sm:$0xff]  ;;  %v243_v21 = vld [vmem:[%s242_s29] sm:$0xff] }
  0xb3   : > { %v457_v20 = vpack.c.bf16 %v246_v19, %v245_v18  ;;  %v244_v22 = vmul.f32 10.0, %v243_v21 }
  0xb5   : > { %459 = vmatpush3.bf16.xpose.msk.msra.mxu0 %vm458_vm2, %v457_v20 }
  0xbc   : > { %454 = vmatmul.mubr.msk.f32.vlgmr.msra.gmra.mrb[0].mxu0 %vm224_vm0, %v244_v22 }
 0x18f   : > { %v323_v25 = vpop.f32.mrb[0].mxu0 }
 0x190   : > { %v455_v26 = vpop.f32.mrb[1].mxu0  ;;  %v338_v27 = vsel %vm336_vm3, 0.0, %v323_v25  ;;  %v337_v28 = vsel %vm336_vm3, %v323_v25, 0.0 }
 0x191   : > { %v346_v29 = vsel %vm339_vm4, %v338_v27, -inf  ;;  %v343_v35 = vsel %vm339_vm4, %v337_v28, -inf  ;;  %v340_v36 = vsel %vm339_vm4, %v337_v28, 0.0 }
 0x192   : > { %347 = vmax.xlane.f32.xlu1 %v346_v29 }
 0x21f   : > { %v348_v30 = vpop.xlane.xlu1 %347 }
 0x220   : > { %v349_v31 = vsub.f32 %v338_v27, %v348_v30 }
 0x222   : > { %v350_v32 = vmul.f32 1.442695, %v349_v31 }
 0x224   : > { %494 = vpow2.f32 %v350_v32 }
 0x22e   : > { %v495_v33 = vpop.eup %494 }
 0x22f   : > { %v352_v34 = vsel %vm339_vm4, %v495_v33, 0.0 }
 0x230   : > { %353 = vadd.xlane.f32.xlu0 %v352_v34 }
 0x234   : > { %344 = vmax.xlane.f32.xlu0 %v343_v35 }
 0x238   : > { %341 = vadd.xlane.f32.xlu0 %v340_v36 }
 0x2bd   : > { %v354_v37 = vpop.xlane.xlu0 %353 }
 0x2be   : > { %496 = vlog2.f32 %v354_v37 }
 0x2c1   : > { %v345_v38 = vpop.xlane.xlu0 %344 }
 0x2c2   : > { %v358_v41 = vadd.f32 %v348_v30, %v345_v38 }
 0x2c5   : > { %v342_v42 = vpop.xlane.xlu0 %341 }
 0x2c6   : > { %v357_v45 = vsub.f32 0.0, %v342_v42 }
 0x2c8   : > { %v497_v39 = vpop.eup %496 }
 0x2c9   : > { %v356_v40 = vmul.f32 0.6931472, %v497_v39 }
 0x2cb   : > { %v359_v43 = vadd.f32 %v358_v41, %v356_v40 }
 0x2cd   : > { %v360_v44 = vmul.f32 16.0, %v359_v43 }
 0x2cf   : > { %v361_v46 = vadd.f32 %v360_v44, %v357_v45 }
 0x2d1   : > { %363 = vst.msk [vmem:[%s215_s8] sm:$0xff] %vm362_vm5, %v361_v46 }
 0x2d2 PF: > { %s14_s17 = sadd.s32 1, %s520_s17   ;;  %s621_s15 = smov %s516_s16 }
 0x2d3   : > { %p11_p5 = scmp.ge.s32.totalorder %s14_s17, 4   ;;  %s622_s16 = smov %s624_s18 }
 0x2d5   :  { %13 = sbr.rel (!%p11_p5) target bundleno = 2 (0x2), region = 71 }

</bundles_post_ra>
